<compile_context>
chip_gen: v5e
topology: v5e:2x2
jax: 0.10.0
libtpu: 0.0.40
codegen_flags: <defaults>
</compile_context>

<pallas_src>
import functools

import jax
import jax.numpy as jnp
from jax import lax
from jax.experimental import pallas as pl
from jax.experimental.pallas import tpu as pltpu

GAMMA = 2            # module default (hard-coded as a square below)
ALPHA = 1.0          # module default (== 1, folded into the sign)
SIZE_AVERAGE = True  # module default

_LANE = 128
# Per-buffer budget for the double-buffered logits block: conservative enough
# for v5e's 16 MiB default scoped VMEM and v7x's 64 MiB physical VMEM.
_BLOCK_BUDGET_BYTES = 8 * 1024 * 1024


def _round_up(x, m):
    return ((x + m - 1) // m) * m


def _focal_loss_kernel(logits_ref, labels_ref, out_ref, *, seq_len, seq_tile,
                       padded):
    # logits_ref: (B, C, TS) input dtype; labels_ref: (B, TS) int32
    # out_ref   : (1, 1, 128) f32 per-tile partial sums (lane-dense)
    x = logits_ref[...].astype(jnp.float32)   # cast after the (possibly bf16) DMA
    labels = labels_ref[...]
    B, C, TS = x.shape

    # log_softmax over axis 0 (PyTorch implicit dim for 3-D input).  Axis 0 is
    # the leading (non-layout) axis, so this is pure elementwise VPU/EUP work.
    m = jnp.max(x, axis=0, keepdims=True)
    lse = jnp.log(jnp.sum(jnp.exp(x - m), axis=0, keepdims=True)) + m
    log_p = x - lse                           # (B, C, TS)

    # Focal term without materializing a one-hot tensor:
    #   fl = -(1 - log_p)^2 * log_p   at the labelled class (gamma == 2)
    #   fl = -log_p                   elsewhere (pt == 0 -> sub_pt == 1)
    cls_idx = lax.broadcasted_iota(jnp.int32, (B, C, TS), 1)
    is_label = cls_idx == labels[:, None, :]
    one_minus = 1.0 - log_p
    fl = -log_p * jnp.where(is_label, one_minus * one_minus, 1.0)

    if padded:
        # Zero out contributions from padded sequence positions (s >= seq_len).
        pos = pl.program_id(0) * seq_tile + lax.broadcasted_iota(
            jnp.int32, (1, 1, TS), 2)
        fl = jnp.where(pos < seq_len, fl, 0.0)

    # Per-tile partial sum, folded to a single lane-dense (1, 1, 128) row; the
    # cross-tile reduction and the mean's divide happen once, in the wrapper.
    col = jnp.sum(jnp.sum(fl, axis=0, keepdims=True), axis=1, keepdims=True)
    col = col.reshape(TS // _LANE, _LANE)
    out_ref[...] = jnp.sum(col, axis=0, keepdims=True)[None]


def focal_loss1(logits, labels, *, size_average=SIZE_AVERAGE):
    """logits: (B, C, S) float (f32 or bf16); labels: (B, S) int. -> scalar f32."""
    B, C, S = logits.shape
    assert labels.shape == (B, S)
    labels = labels.astype(jnp.int32)

    itemsize = jnp.dtype(logits.dtype).itemsize
    s_pad = _round_up(S, _LANE)
    seq_tile = _LANE
    for cand in (1024, 512, 256, _LANE):
        if s_pad % cand == 0 and 2 * B * C * cand * itemsize <= _BLOCK_BUDGET_BYTES:
            seq_tile = cand
            break
    num_tiles = s_pad // seq_tile
    padded = s_pad != S
    if padded:
        logits = jnp.pad(logits, ((0, 0), (0, 0), (0, s_pad - S)))
        labels = jnp.pad(labels, ((0, 0), (0, s_pad - S)))

    kernel = functools.partial(_focal_loss_kernel, seq_len=S,
                               seq_tile=seq_tile, padded=padded)

    cost = pl.CostEstimate(
        flops=12 * B * C * s_pad,
        transcendentals=(B + 1) * C * s_pad,       # exp over (B,C,S) + log over (C,S)
        bytes_accessed=B * C * s_pad * itemsize + B * s_pad * 4
        + num_tiles * _LANE * 4,
    )

    partials = pl.pallas_call(
        kernel,
        out_shape=jax.ShapeDtypeStruct((num_tiles, 1, _LANE), jnp.float32),
        grid=(num_tiles,),
        in_specs=[
            pl.BlockSpec((B, C, seq_tile), lambda s: (0, 0, s)),  # B, C whole
            pl.BlockSpec((B, seq_tile), lambda s: (0, s)),
        ],
        out_specs=pl.BlockSpec((1, 1, _LANE), lambda s: (s, 0, 0)),
        compiler_params=pltpu.CompilerParams(
            dimension_semantics=("parallel",),     # seq tiles are independent
            vmem_limit_bytes=32 * 1024 * 1024,
        ),
        cost_estimate=cost,
    )(logits, labels)

    total = jnp.sum(partials)
    denom = jnp.float32(B * C * S)
    return total / denom if size_average else total


def _focal_loss1_ref(logits, labels):
    """Pure-JAX reference mirroring the PyTorch module exactly."""
    logits = logits.astype(jnp.float32)
    B, C, S = logits.shape
    onehot = jax.nn.one_hot(labels, C, axis=1, dtype=jnp.float32)  # (B, C, S)
    log_p = jax.nn.log_softmax(logits, axis=0)                     # implicit dim=0
    pt = onehot * log_p
    sub_pt = 1.0 - pt
    fl = -ALPHA * sub_pt ** GAMMA * log_p
    return jnp.mean(fl) if SIZE_AVERAGE else jnp.sum(fl)


if __name__ == "__main__":
    key = jax.random.PRNGKey(0)
    k1, k2 = jax.random.split(key)

    B, C, S = 2, 4, 8   # batch, labels_length, seq_length
    logits = jax.random.normal(k1, (B, C, S), dtype=jnp.float32)
    labels = jax.random.randint(k2, (B, S), 0, C, dtype=jnp.int32)

    loss = focal_loss1(logits, labels)
    jax.block_until_ready(loss)

    ref = _focal_loss1_ref(logits, labels)
    assert jnp.allclose(loss, ref, rtol=1e-5, atol=1e-6), (loss, ref)

    print("KERNEL_OK")
</pallas_src>

<mosaic_0001>
module attributes {stable_mosaic.version = 11 : i64} {
  func.func @_focal_loss_kernel(%arg0: i32, %arg1: memref<2x4x128xf32, #tpu.memory_space<vmem>>, %arg2: memref<2x128xi32, #tpu.memory_space<vmem>>, %arg3: memref<1x1x128xf32, #tpu.memory_space<vmem>>) attributes {dimension_semantics = [#tpu.dimension_semantics<parallel>], iteration_bounds = array<i64: 1>, scalar_prefetch = 0 : i64, scratch_operands = 0 : i64, tpu.core_type = #tpu.core_type<tc>, window_params = [{transform_indices = @transform_0, window_bounds = array<i64: 2, 4, 128>}, {transform_indices = @transform_1, window_bounds = array<i64: 2, 128>}, {transform_indices = @transform_2, window_bounds = array<i64: 1, 1, 128>}]} {
    %c0 = arith.constant 0 : index
    %c0_0 = arith.constant 0 : index
    %c0_1 = arith.constant 0 : index
    %0 = vector.load %arg1[%c0, %c0_0, %c0_1] : memref<2x4x128xf32, #tpu.memory_space<vmem>>, vector<2x4x128xf32>
    %c0_2 = arith.constant 0 : index
    %c0_3 = arith.constant 0 : index
    %1 = vector.load %arg2[%c0_2, %c0_3] : memref<2x128xi32, #tpu.memory_space<vmem>>, vector<2x128xi32>
    %cst = arith.constant dense<0xFF800000> : vector<4x128xf32>
    %2 = vector.multi_reduction <maximumf>, %0, %cst [0] : vector<2x4x128xf32> to vector<4x128xf32>
    %3 = vector.shape_cast %2 : vector<4x128xf32> to vector<1x4x128xf32>
    %4 = vector.broadcast %3 : vector<1x4x128xf32> to vector<2x4x128xf32>
    %5 = arith.subf %0, %4 : vector<2x4x128xf32>
    %6 = math.exp %5 : vector<2x4x128xf32>
    %cst_4 = arith.constant dense<0.000000e+00> : vector<4x128xf32>
    %7 = vector.multi_reduction <add>, %6, %cst_4 [0] : vector<2x4x128xf32> to vector<4x128xf32>
    %8 = vector.shape_cast %7 : vector<4x128xf32> to vector<1x4x128xf32>
    %9 = math.log %8 : vector<1x4x128xf32>
    %10 = arith.addf %9, %3 : vector<1x4x128xf32>
    %11 = vector.broadcast %10 : vector<1x4x128xf32> to vector<2x4x128xf32>
    %12 = arith.subf %0, %11 : vector<2x4x128xf32>
    %13 = tpu.iota {dimensions = array<i32: 1>} : vector<2x4x128xi32>
    %14 = vector.shape_cast %1 : vector<2x128xi32> to vector<2x1x128xi32>
    %15 = vector.broadcast %14 : vector<2x1x128xi32> to vector<2x4x128xi32>
    %16 = arith.cmpi eq, %13, %15 : vector<2x4x128xi32>
    %cst_5 = arith.constant 1.000000e+00 : f32
    %17 = vector.broadcast %cst_5 : f32 to vector<2x4x128xf32>
    %18 = arith.subf %17, %12 : vector<2x4x128xf32>
    %cst_6 = arith.constant 0.000000e+00 : f32
    %19 = vector.broadcast %cst_6 : f32 to vector<2x4x128xf32>
    %20 = arith.subf %19, %12 : vector<2x4x128xf32>
    %21 = arith.mulf %18, %18 : vector<2x4x128xf32>
    %cst_7 = arith.constant 1.000000e+00 : f32
    %22 = vector.broadcast %cst_7 : f32 to vector<2x4x128xf32>
    %23 = arith.select %16, %21, %22 : vector<2x4x128xi1>, vector<2x4x128xf32>
    %24 = arith.mulf %20, %23 : vector<2x4x128xf32>
    %c128_i32 = arith.constant 128 : i32
    %25 = arith.muli %arg0, %c128_i32 : i32
    %26 = tpu.iota {dimensions = array<i32: 2>} : vector<1x1x128xi32>
    %27 = vector.broadcast %25 : i32 to vector<1x1x128xi32>
    %28 = arith.addi %27, %26 : vector<1x1x128xi32>
    %c8_i32 = arith.constant 8 : i32
    %29 = vector.broadcast %c8_i32 : i32 to vector<1x1x128xi32>
    %30 = arith.cmpi slt, %28, %29 : vector<1x1x128xi32>
    %cst_8 = arith.constant 0.000000e+00 : f32
    %31 = vector.shape_cast %30 : vector<1x1x128xi1> to vector<1x1x128xi1>
    %32 = vector.broadcast %31 : vector<1x1x128xi1> to vector<2x4x128xi1>
    %33 = vector.broadcast %cst_8 : f32 to vector<2x4x128xf32>
    %34 = arith.select %32, %24, %33 : vector<2x4x128xi1>, vector<2x4x128xf32>
    %cst_9 = arith.constant dense<0.000000e+00> : vector<4x128xf32>
    %35 = vector.multi_reduction <add>, %34, %cst_9 [0] : vector<2x4x128xf32> to vector<4x128xf32>
    %36 = vector.shape_cast %35 : vector<4x128xf32> to vector<1x4x128xf32>
    %cst_10 = arith.constant dense<0.000000e+00> : vector<1x128xf32>
    %37 = vector.multi_reduction <add>, %36, %cst_10 [1] : vector<1x4x128xf32> to vector<1x128xf32>
    %38 = vector.shape_cast %37 : vector<1x128xf32> to vector<1x1x128xf32>
    %39 = vector.shape_cast %38 : vector<1x1x128xf32> to vector<1x128xf32>
    %cst_11 = arith.constant dense<0.000000e+00> : vector<128xf32>
    %40 = vector.multi_reduction <add>, %39, %cst_11 [0] : vector<1x128xf32> to vector<128xf32>
    %41 = vector.shape_cast %40 : vector<128xf32> to vector<1x128xf32>
    %42 = vector.shape_cast %41 : vector<1x128xf32> to vector<1x1x128xf32>
    %c0_12 = arith.constant 0 : index
    %c0_13 = arith.constant 0 : index
    %c0_14 = arith.constant 0 : index
    %43 = vector.load %arg3[%c0_12, %c0_13, %c0_14] : memref<1x1x128xf32, #tpu.memory_space<vmem>>, vector<1x1x128xf32>
    tpu.vector_store %arg3[%c0_12, %c0_13, %c0_14], %42 {strides = array<i32>} : memref<1x1x128xf32, #tpu.memory_space<vmem>>, vector<1x1x128xf32>,
    return
  }
  func.func @transform_0(%arg0: i32) -> (i32, i32, i32) {
    %c0_i32 = arith.constant 0 : i32
    %c0_i32_0 = arith.constant 0 : i32
    %c0_i32_1 = arith.constant 0 : i32
    return %c0_i32, %c0_i32_0, %arg0 : i32, i32, i32
  }
  func.func @transform_1(%arg0: i32) -> (i32, i32) {
    %c0_i32 = arith.constant 0 : i32
    %c0_i32_0 = arith.constant 0 : i32
    return %c0_i32, %arg0 : i32, i32
  }
  func.func @transform_2(%arg0: i32) -> (i32, i32, i32) {
    %c0_i32 = arith.constant 0 : i32
    %c0_i32_0 = arith.constant 0 : i32
    %c0_i32_1 = arith.constant 0 : i32
    return %arg0, %c0_i32, %c0_i32_0 : i32, i32, i32
  }
}

</mosaic_0001>

<bundles_post_ra>
// kernel: tpu_custom_call.1
= control target key start
LH: loop header
LB: loop body
LE: loop exit
PB: predicated region body
PF: predicated region fallthrough
CT: control target
= control target key end

     0   :  { %7 = vsyncpa [#allocation3], 0  ;;  %s245_s0 = inlined_call_operand.hbm [shape: f32[2,4,128], index: 0, kind: input, shape index: {}]   ;;  %s246_s1 = inlined_call_operand.hbm [shape: s32[2,128], index: 1, kind: input, shape index: {}]   ;;  %s247_s2 = inlined_call_operand.hbm [shape: f32[1,1,128], index: 2, kind: output, shape index: {}]  }
   0x1   :  { %8 = vsyncpa [#allocation6], 0 }
   0x2   :  { %9 = vsyncpa [#allocation4], 0  ;;  %s14_s11 = sshll.u32 %s245_s0, 4  ;;  %s209_s12 = smov [#allocation2]   ;;  %s15_s11 = int_to_ptr.hbm [resolvable:$true] %s14_s11 }
   0x3   :  { %s16_s13 = sshll.u32 %s209_s12, 4  ;;  %s28_s16 = sshll.u32 %s246_s1, 4  ;;  %s17_s13 = int_to_ptr.vmem [resolvable:$true] %s16_s13  ;;  %s29_s16 = int_to_ptr.hbm [resolvable:$true] %s28_s16 }
   0x4   :  { %s210_s17 = smov 64   ;;  %s211_s18 = smov 4  }
   0x5   :  { %22 = dma.hbm_to_vmem [thread:$0]  %s15_s11, 128, %s17_s13, [#allocation3], %s210_s17, %s210_s17, %s211_s18  }
   0x6   :  { %s212_s19 = smov [#allocation5]  }
   0x7   :  { %s30_s20 = sshll.u32 %s212_s19, 4  ;;  %s31_s20 = int_to_ptr.vmem [resolvable:$true] %s30_s20 }
   0x8   :  { %33 = dma.hbm_to_vmem [thread:$0]  %s29_s16, 32, %s31_s20, [#allocation6]  }
   0x9   :  { %203 = dma.done.wait [#allocation3], 128  }
   0xa   :  { %204 = vsyncadd [#allocation3], 4294967168 }
   0xb   :  { %205 = dma.done.wait [#allocation6], 32  }
   0xc   :  { %206 = vsyncadd [#allocation6], 4294967264  ;;  %vm45_vm0 = vcmask 1043456   ;;  %v42_v0 = vld [vmem:[#allocation2] sm:$0xf]  ;;  %v63_v16 = vlaneseq  ;;  %s213_s0 = smov [#allocation7]  }
   0xd   :  { %v43_v1 = vld [vmem:[#allocation2 + $0x4] sm:$0xf]  ;;  %v46_v2 = vsel %vm45_vm0, %v42_v0, -inf  ;;  %v44_v14 = vld [vmem:[#allocation5] sm:$0x3]  ;;  %s107_s1 = sshll.u32 %s213_s0, 4  ;;  %s108_s1 = int_to_ptr.vmem [resolvable:$true] %s107_s1 }
   0xe   :  { %v47_v3 = vsel %vm45_vm0, %v43_v1, -inf  ;;  %v65_v17 = vrot.slane %v44_v14, 1  ;;  %v64_v20 = vshrl.u32 %v63_v16, 7  ;;  %v66_v21 = vperm.slane %v44_v14, 0  ;;  %s109_s23 = sshll.u32 %s247_s2, 4  ;;  %s110_s23 = int_to_ptr.hbm [resolvable:$true] %s109_s23 }
   0xf   :  { %v48_v4 = vmax.f32 %v46_v2, %v47_v3  ;;  %v82_v27 = vand.u32 127, %v63_v16 }
  0x10   :  { %v67_v22 = vperm.slane %v65_v17, 0  ;;  %vm68_vm1 = vcmp.eq.s32.totalorder %v64_v20, %v66_v21 }
  0x11   :  { %v49_v5 = vsub.f32 %v42_v0, %v48_v4  ;;  %v50_v6 = vsub.f32 %v43_v1, %v48_v4  ;;  %vm85_vm3 = vcmp.lt.s32.totalorder %v82_v27, 8 }
  0x12   :  { %vm69_vm2 = vcmp.eq.s32.totalorder %v64_v20, %v67_v22 }
  0x13   :  { %v51_v7 = vmul.f32 1.442695, %v49_v5  ;;  %v53_v8 = vmul.f32 1.442695, %v50_v6 }
  0x15   :  { %125 = vpow2.f32 %v51_v7 }
  0x16   :  { %127 = vpow2.f32 %v53_v8 }
  0x1b   :  { %v126_v9 = vpop.eup %125 }
  0x1c   :  { %v128_v10 = vpop.eup %127  ;;  %v55_v11 = vsel %vm45_vm0, %v126_v9, 0.0 }
  0x1d   :  { %v56_v12 = vsel %vm45_vm0, %v128_v10, 0.0 }
  0x1e   :  { %v57_v13 = vadd.f32 %v56_v12, %v55_v11 }
  0x20   :  { %129 = vlog2.f32 %v57_v13 }
  0x26   :  { %v130_v15 = vpop.eup %129 }
  0x27   :  { %v59_v18 = vmul.f32 0.6931472, %v130_v15 }
  0x29   :  { %v60_v19 = vadd.f32 %v59_v18, %v48_v4 }
  0x2b   :  { %v61_v23 = vsub.f32 %v42_v0, %v60_v19  ;;  %v62_v24 = vsub.f32 %v43_v1, %v60_v19 }
  0x2d   :  { %v70_v25 = vsub.f32 1.0, %v61_v23  ;;  %v71_v26 = vsub.f32 1.0, %v62_v24  ;;  %v72_v28 = vsub.f32 0.0, %v61_v23  ;;  %v73_v29 = vsub.f32 0.0, %v62_v24 }
  0x2f   :  { %v74_v30 = vmul.f32 %v70_v25, %v70_v25  ;;  %v75_v31 = vmul.f32 %v71_v26, %v71_v26 }
  0x31   :  { %v76_v32 = vsel %vm68_vm1, %v74_v30, 1.0  ;;  %v77_v33 = vsel %vm69_vm2, %v75_v31, 1.0 }
  0x32   :  { %v78_v34 = vmul.f32 %v76_v32, %v72_v28  ;;  %v79_v35 = vmul.f32 %v77_v33, %v73_v29 }
  0x34   :  { %v88_v36 = vsel %vm85_vm3, %v78_v34, 0.0  ;;  %v89_v37 = vsel %vm85_vm3, %v79_v35, 0.0 }
  0x35   :  { %v90_v38 = vsel %vm45_vm0, %v88_v36, 0.0  ;;  %v91_v39 = vsel %vm45_vm0, %v89_v37, 0.0 }
  0x36   :  { %v92_v40 = vadd.f32 %v91_v39, %v90_v38 }
  0x38   :  { %v93_v41 = vsel %vm45_vm0, %v92_v40, 0.0 }
  0x39   :  { %v94_v42 = vrot.slane %v93_v41, 4 }
  0x3b   :  { %v95_v43 = vadd.f32 %v94_v42, %v93_v41 }
  0x3d   :  { %v96_v44 = vrot.slane %v95_v43, 2 }
  0x3f   :  { %v97_v45 = vadd.f32 %v96_v44, %v95_v43 }
  0x41   :  { %v98_v46 = vrot.slane %v97_v45, 1 }
  0x43   :  { %v99_v47 = vadd.f32 %v98_v46, %v97_v45 }
  0x45   :  { %101 = vst [vmem:[#allocation7] sm:$0x1] %v99_v47 }
  0x46   :  { %112 = dma.vmem_to_hbm [thread:$0]  %s108_s1, 16, %s110_s23, [#allocation4]  }
  0x47   :  { %207 = dma.done.wait [#allocation4], 16  }
  0x48   :  { %208 = vsyncadd [#allocation4], 4294967280 }
  0x49   :  { %117 = vsyncpa [#allocation3], 1 }
  0x4a   :  { %118 = vsyncpa [#allocation6], 1 }
  0x4b   :  { %119 = vsyncpa [#allocation4], 1 }

</bundles_post_ra>
